<compile_context>
chip_gen: v7x
topology: tpu7x:2x2x1
jax: 0.10.0
libtpu: 0.0.40
codegen_flags: <defaults>
</compile_context>

<pallas_src>
import math

import jax
import jax.numpy as jnp
from jax.experimental import pallas as pl
from jax.experimental.pallas import tpu as pltpu


# ----------------------------------------------------------------------------
# Host glue: normalized laplacian with self loop (same math as the torch helper)
# ----------------------------------------------------------------------------
def calculate_laplacian_with_self_loop(adj):
    hp = jax.lax.Precision.HIGHEST
    m = adj + jnp.eye(adj.shape[0], dtype=adj.dtype)
    row_sum = jnp.sum(m, axis=1)
    d_inv_sqrt = jnp.power(row_sum, -0.5)
    d_inv_sqrt = jnp.where(jnp.isinf(d_inv_sqrt), 0.0, d_inv_sqrt)
    d = jnp.diag(d_inv_sqrt)
    return jnp.matmul(jnp.matmul(m, d, precision=hp).T, d, precision=hp)


# ----------------------------------------------------------------------------
# Fused kernel: full TGCN recurrence in one invocation (no grid).
#   xp1_ref: (T, B, N*2H)  hoisted x-projection (+bias) for graph conv 1
#   xp2_ref: (T, B, N*H)   hoisted x-projection (+bias) for graph conv 2
#   g1h_ref: (N*H, N*2H)   hidden-path kron-folded weights, conv 1
#   g2h_ref: (N*H, N*H)    hidden-path kron-folded weights, conv 2
#   h_ref:   (B, N*H)      output = final hidden state (flat, lane-dense)
# ----------------------------------------------------------------------------
def _tgcn_fused_kernel(xp1_ref, xp2_ref, g1h_ref, g2h_ref, h_ref):
    T = xp1_ref.shape[0]
    nh = h_ref.shape[-1]

    # Hidden-path weights loaded once, reused across every step.
    g1h = g1h_ref[...]
    g2h = g2h_ref[...]

    def step(t, h):
        # graph conv 1 (+ sigmoid): hoisted x-projection + h-path matmul
        pre1 = xp1_ref[t] + jnp.dot(h, g1h, preferred_element_type=jnp.float32)
        gates = jax.nn.sigmoid(pre1)
        # NOTE: torch.chunk(gates, 2, dim=1) on the flat (B, N*2H) layout splits
        # ACROSS NODES (r = the full gate vectors of the first half of the
        # node*channel columns), NOT into per-node reset/update channels.  This
        # reproduces the reference torch module exactly — do not "fix" it.
        r = gates[:, :nh]
        u = gates[:, nh:]
        # graph conv 2 (+ tanh) on r*h, then GRU state update
        pre2 = xp2_ref[t] + jnp.dot(r * h, g2h, preferred_element_type=jnp.float32)
        c = jnp.tanh(pre2)
        return u * h + (1.0 - u) * c

    h0 = jnp.zeros(h_ref.shape, jnp.float32)
    h_ref[...] = jax.lax.fori_loop(0, T, step, h0, unroll=True)


def tgcn_forward(inputs, adj, w1, b1, w2, b2, hidden_dim):
    B, T, N = inputs.shape
    H = hidden_dim
    hp = jax.lax.Precision.HIGHEST

    lap_t = calculate_laplacian_with_self_loop(adj).T

    # Exact Kronecker fold of  (L @ [x | h]) @ W + b  onto the flat (B, N*H)
    # layout (no approximation):
    #   out_flat[b, n*O+o] = sum_m L[n,m] x[b,m] W[0,o]
    #                      + sum_{m,k} L[n,m] h[b,m,k] W[1+k,o] + bias[o]
    g1x = jnp.kron(lap_t, w1[:1, :])   # (N,   N*2H)  x-path, conv1
    g1h = jnp.kron(lap_t, w1[1:, :])   # (N*H, N*2H)  h-path, conv1
    g2x = jnp.kron(lap_t, w2[:1, :])   # (N,   N*H)   x-path, conv2
    g2h = jnp.kron(lap_t, w2[1:, :])   # (N*H, N*H)   h-path, conv2
    b1f = jnp.tile(b1, N)              # (N*2H,)
    b2f = jnp.tile(b2, N)              # (N*H,)

    # Hoisted, time-independent input projections for BOTH convs: one matmul
    # over all T steps outside the recurrence, biases folded in.
    gx = jnp.concatenate([g1x, g2x], axis=1)           # (N, N*3H)
    bx = jnp.concatenate([b1f, b2f])                    # (N*3H,)
    x_tmaj = jnp.swapaxes(inputs, 0, 1)                 # (T, B, N) time-major
    xproj = jnp.dot(x_tmaj.reshape(T * B, N), gx, precision=hp) + bx
    xproj = xproj.reshape(T, B, N * 3 * H)
    xp1 = xproj[:, :, : N * 2 * H]                      # (T, B, N*2H)
    xp2 = xproj[:, :, N * 2 * H:]                       # (T, B, N*H)

    # Everything is tiny here (g1h 128 KiB, g2h 64 KiB, xproj ~12 KiB): keep all
    # operands whole-array VMEM resident and run the recurrence in one shot.
    vmem = pl.BlockSpec(memory_space=pltpu.MemorySpace.VMEM)
    h_flat = pl.pallas_call(
        _tgcn_fused_kernel,
        out_shape=jax.ShapeDtypeStruct((B, N * H), jnp.float32),
        in_specs=[vmem, vmem, vmem, vmem],
        out_specs=vmem,
    )(xp1, xp2, g1h, g2h)
    return h_flat.reshape(B, N, H)   # == torch output.reshape(B, N, H)


# ----------------------------------------------------------------------------
# Pure-JAX reference that mirrors the torch code literally (for verification)
# ----------------------------------------------------------------------------
def _graph_conv_ref(lap, weights, biases, x, hidden_flat, H, O):
    B, N = x.shape
    inputs = x.reshape(B, N, 1)
    hidden = hidden_flat.reshape(B, N, H)
    concat = jnp.concatenate([inputs, hidden], axis=2)            # (B, N, H+1)
    concat = jnp.transpose(concat, (1, 2, 0)).reshape(N, (H + 1) * B)
    a = lap @ concat
    a = a.reshape(N, H + 1, B)
    a = jnp.transpose(a, (2, 0, 1)).reshape(B * N, H + 1)
    out = a @ weights + biases
    return out.reshape(B, N * O)


def _tgcn_ref(inputs, adj, w1, b1, w2, b2, H):
    B, T, N = inputs.shape
    lap = calculate_laplacian_with_self_loop(adj)
    h = jnp.zeros((B, N * H), jnp.float32)
    out = None
    for t in range(T):
        x = inputs[:, t, :]
        conc = jax.nn.sigmoid(_graph_conv_ref(lap, w1, b1, x, h, H, 2 * H))
        r, u = jnp.split(conc, 2, axis=1)
        c = jnp.tanh(_graph_conv_ref(lap, w2, b2, x, r * h, H, H))
        h = u * h + (1.0 - u) * c
        out = h.reshape(B, N, H)
    return out


def _xavier_uniform(key, shape):
    fan_in, fan_out = shape
    bound = math.sqrt(6.0 / (fan_in + fan_out))
    return jax.random.uniform(key, shape, jnp.float32, -bound, bound)


if __name__ == "__main__":
    B, T, N, H = 2, 4, 16, 8   # batch, seq_len, num_nodes, hidden_dim

    key = jax.random.PRNGKey(0)
    k_adj, k_w1, k_w2, k_x = jax.random.split(key, 4)

    # deterministic symmetric weighted adjacency
    a = jax.random.uniform(k_adj, (N, N), jnp.float32)
    adj = (a + a.T) * 0.5

    # parameters (same shapes/init scheme as the torch module)
    w1 = _xavier_uniform(k_w1, (H + 1, 2 * H))   # graph_conv1 weights
    b1 = jnp.full((2 * H,), 1.0, jnp.float32)    # graph_conv1 bias init = 1.0
    w2 = _xavier_uniform(k_w2, (H + 1, H))       # graph_conv2 weights
    b2 = jnp.zeros((H,), jnp.float32)            # graph_conv2 bias init = 0.0

    inputs = jax.random.normal(k_x, (B, T, N), jnp.float32)

    fwd = jax.jit(tgcn_forward, static_argnums=(6,))
    out = fwd(inputs, adj, w1, b1, w2, b2, H)
    out = jax.block_until_ready(out)
    assert out.shape == (B, N, H)

    with jax.default_matmul_precision("highest"):
        ref = _tgcn_ref(inputs, adj, w1, b1, w2, b2, H)
    max_diff = float(jnp.max(jnp.abs(out - ref)))
    if max_diff > 1e-2:
        raise AssertionError(f"Pallas TGCN mismatch vs reference: max_diff={max_diff}")

    print("KERNEL_OK")
</pallas_src>

<mosaic_0001>
module attributes {stable_mosaic.version = 11 : i64} {
  func.func @_tgcn_fused_kernel(%arg0: memref<4x2x256xf32, #tpu.memory_space<vmem>>, %arg1: memref<4x2x128xf32, #tpu.memory_space<vmem>>, %arg2: memref<128x256xf32, #tpu.memory_space<vmem>>, %arg3: memref<128x128xf32, #tpu.memory_space<vmem>>, %arg4: memref<2x128xf32, #tpu.memory_space<vmem>>) attributes {dimension_semantics = [], scalar_prefetch = 0 : i64, scratch_operands = 0 : i64, tpu.core_type = #tpu.core_type<tc>} {
    %c0 = arith.constant 0 : index
    %c0_0 = arith.constant 0 : index
    %0 = vector.load %arg2[%c0, %c0_0] : memref<128x256xf32, #tpu.memory_space<vmem>>, vector<128x256xf32>
    %c0_1 = arith.constant 0 : index
    %c0_2 = arith.constant 0 : index
    %1 = vector.load %arg3[%c0_1, %c0_2] : memref<128x128xf32, #tpu.memory_space<vmem>>, vector<128x128xf32>
    %cst = arith.constant 0.000000e+00 : f32
    %2 = vector.broadcast %cst : f32 to vector<2x128xf32>
    %c0_i32 = arith.constant 0 : i32
    %3 = arith.index_cast %c0_i32 : i32 to index
    %c0_3 = arith.constant 0 : index
    %c0_4 = arith.constant 0 : index
    %4 = vector.load %arg0[%3, %c0_3, %c0_4] : memref<4x2x256xf32, #tpu.memory_space<vmem>>, vector<1x2x256xf32>
    %5 = vector.shape_cast %4 : vector<1x2x256xf32> to vector<2x256xf32>
    %cst_5 = arith.constant dense<0.000000e+00> : vector<2x256xf32>
    %6 = tpu.matmul %2, %0, %cst_5 {dimension_numbers = #tpu.dot_dimension_numbers<[1], [0], [0], [1], [0, 0, 1, 1], [], []>} : vector<2x128xf32>, vector<128x256xf32>, vector<2x256xf32> -> vector<2x256xf32>
    %7 = arith.addf %5, %6 : vector<2x256xf32>
    %8 = arith.negf %7 : vector<2x256xf32>
    %9 = math.exp %8 : vector<2x256xf32>
    %cst_6 = arith.constant 1.000000e+00 : f32
    %10 = vector.broadcast %cst_6 : f32 to vector<2x256xf32>
    %11 = arith.addf %10, %9 : vector<2x256xf32>
    %12 = arith.divf %10, %11 : vector<2x256xf32>
    %13 = vector.extract_strided_slice %12 {offsets = [0, 0], sizes = [2, 128], strides = [1, 1]} : vector<2x256xf32> to vector<2x128xf32>
    %14 = vector.extract_strided_slice %12 {offsets = [0, 128], sizes = [2, 128], strides = [1, 1]} : vector<2x256xf32> to vector<2x128xf32>
    %15 = arith.index_cast %c0_i32 : i32 to index
    %c0_7 = arith.constant 0 : index
    %c0_8 = arith.constant 0 : index
    %16 = vector.load %arg1[%15, %c0_7, %c0_8] : memref<4x2x128xf32, #tpu.memory_space<vmem>>, vector<1x2x128xf32>
    %17 = vector.shape_cast %16 : vector<1x2x128xf32> to vector<2x128xf32>
    %18 = arith.mulf %13, %2 : vector<2x128xf32>
    %cst_9 = arith.constant dense<0.000000e+00> : vector<2x128xf32>
    %19 = tpu.matmul %18, %1, %cst_9 {dimension_numbers = #tpu.dot_dimension_numbers<[1], [0], [0], [1], [0, 0, 1, 1], [], []>} : vector<2x128xf32>, vector<128x128xf32>, vector<2x128xf32> -> vector<2x128xf32>
    %20 = arith.addf %17, %19 : vector<2x128xf32>
    %21 = math.tanh %20 : vector<2x128xf32>
    %22 = arith.mulf %14, %2 : vector<2x128xf32>
    %cst_10 = arith.constant 1.000000e+00 : f32
    %23 = vector.broadcast %cst_10 : f32 to vector<2x128xf32>
    %24 = arith.subf %23, %14 : vector<2x128xf32>
    %25 = arith.mulf %24, %21 : vector<2x128xf32>
    %26 = arith.addf %22, %25 : vector<2x128xf32>
    %c1_i32 = arith.constant 1 : i32
    %27 = arith.index_cast %c1_i32 : i32 to index
    %c0_11 = arith.constant 0 : index
    %c0_12 = arith.constant 0 : index
    %28 = vector.load %arg0[%27, %c0_11, %c0_12] : memref<4x2x256xf32, #tpu.memory_space<vmem>>, vector<1x2x256xf32>
    %29 = vector.shape_cast %28 : vector<1x2x256xf32> to vector<2x256xf32>
    %cst_13 = arith.constant dense<0.000000e+00> : vector<2x256xf32>
    %30 = tpu.matmul %26, %0, %cst_13 {dimension_numbers = #tpu.dot_dimension_numbers<[1], [0], [0], [1], [0, 0, 1, 1], [], []>} : vector<2x128xf32>, vector<128x256xf32>, vector<2x256xf32> -> vector<2x256xf32>
    %31 = arith.addf %29, %30 : vector<2x256xf32>
    %32 = arith.negf %31 : vector<2x256xf32>
    %33 = math.exp %32 : vector<2x256xf32>
    %cst_14 = arith.constant 1.000000e+00 : f32
    %34 = vector.broadcast %cst_14 : f32 to vector<2x256xf32>
    %35 = arith.addf %34, %33 : vector<2x256xf32>
    %36 = arith.divf %34, %35 : vector<2x256xf32>
    %37 = vector.extract_strided_slice %36 {offsets = [0, 0], sizes = [2, 128], strides = [1, 1]} : vector<2x256xf32> to vector<2x128xf32>
    %38 = vector.extract_strided_slice %36 {offsets = [0, 128], sizes = [2, 128], strides = [1, 1]} : vector<2x256xf32> to vector<2x128xf32>
    %39 = arith.index_cast %c1_i32 : i32 to index
    %c0_15 = arith.constant 0 : index
    %c0_16 = arith.constant 0 : index
    %40 = vector.load %arg1[%39, %c0_15, %c0_16] : memref<4x2x128xf32, #tpu.memory_space<vmem>>, vector<1x2x128xf32>
    %41 = vector.shape_cast %40 : vector<1x2x128xf32> to vector<2x128xf32>
    %42 = arith.mulf %37, %26 : vector<2x128xf32>
    %cst_17 = arith.constant dense<0.000000e+00> : vector<2x128xf32>
    %43 = tpu.matmul %42, %1, %cst_17 {dimension_numbers = #tpu.dot_dimension_numbers<[1], [0], [0], [1], [0, 0, 1, 1], [], []>} : vector<2x128xf32>, vector<128x128xf32>, vector<2x128xf32> -> vector<2x128xf32>
    %44 = arith.addf %41, %43 : vector<2x128xf32>
    %45 = math.tanh %44 : vector<2x128xf32>
    %46 = arith.mulf %38, %26 : vector<2x128xf32>
    %cst_18 = arith.constant 1.000000e+00 : f32
    %47 = vector.broadcast %cst_18 : f32 to vector<2x128xf32>
    %48 = arith.subf %47, %38 : vector<2x128xf32>
    %49 = arith.mulf %48, %45 : vector<2x128xf32>
    %50 = arith.addf %46, %49 : vector<2x128xf32>
    %c2_i32 = arith.constant 2 : i32
    %51 = arith.index_cast %c2_i32 : i32 to index
    %c0_19 = arith.constant 0 : index
    %c0_20 = arith.constant 0 : index
    %52 = vector.load %arg0[%51, %c0_19, %c0_20] : memref<4x2x256xf32, #tpu.memory_space<vmem>>, vector<1x2x256xf32>
    %53 = vector.shape_cast %52 : vector<1x2x256xf32> to vector<2x256xf32>
    %cst_21 = arith.constant dense<0.000000e+00> : vector<2x256xf32>
    %54 = tpu.matmul %50, %0, %cst_21 {dimension_numbers = #tpu.dot_dimension_numbers<[1], [0], [0], [1], [0, 0, 1, 1], [], []>} : vector<2x128xf32>, vector<128x256xf32>, vector<2x256xf32> -> vector<2x256xf32>
    %55 = arith.addf %53, %54 : vector<2x256xf32>
    %56 = arith.negf %55 : vector<2x256xf32>
    %57 = math.exp %56 : vector<2x256xf32>
    %cst_22 = arith.constant 1.000000e+00 : f32
    %58 = vector.broadcast %cst_22 : f32 to vector<2x256xf32>
    %59 = arith.addf %58, %57 : vector<2x256xf32>
    %60 = arith.divf %58, %59 : vector<2x256xf32>
    %61 = vector.extract_strided_slice %60 {offsets = [0, 0], sizes = [2, 128], strides = [1, 1]} : vector<2x256xf32> to vector<2x128xf32>
    %62 = vector.extract_strided_slice %60 {offsets = [0, 128], sizes = [2, 128], strides = [1, 1]} : vector<2x256xf32> to vector<2x128xf32>
    %63 = arith.index_cast %c2_i32 : i32 to index
    %c0_23 = arith.constant 0 : index
    %c0_24 = arith.constant 0 : index
    %64 = vector.load %arg1[%63, %c0_23, %c0_24] : memref<4x2x128xf32, #tpu.memory_space<vmem>>, vector<1x2x128xf32>
    %65 = vector.shape_cast %64 : vector<1x2x128xf32> to vector<2x128xf32>
    %66 = arith.mulf %61, %50 : vector<2x128xf32>
    %cst_25 = arith.constant dense<0.000000e+00> : vector<2x128xf32>
    %67 = tpu.matmul %66, %1, %cst_25 {dimension_numbers = #tpu.dot_dimension_numbers<[1], [0], [0], [1], [0, 0, 1, 1], [], []>} : vector<2x128xf32>, vector<128x128xf32>, vector<2x128xf32> -> vector<2x128xf32>
    %68 = arith.addf %65, %67 : vector<2x128xf32>
    %69 = math.tanh %68 : vector<2x128xf32>
    %70 = arith.mulf %62, %50 : vector<2x128xf32>
    %cst_26 = arith.constant 1.000000e+00 : f32
    %71 = vector.broadcast %cst_26 : f32 to vector<2x128xf32>
    %72 = arith.subf %71, %62 : vector<2x128xf32>
    %73 = arith.mulf %72, %69 : vector<2x128xf32>
    %74 = arith.addf %70, %73 : vector<2x128xf32>
    %c3_i32 = arith.constant 3 : i32
    %75 = arith.index_cast %c3_i32 : i32 to index
    %c0_27 = arith.constant 0 : index
    %c0_28 = arith.constant 0 : index
    %76 = vector.load %arg0[%75, %c0_27, %c0_28] : memref<4x2x256xf32, #tpu.memory_space<vmem>>, vector<1x2x256xf32>
    %77 = vector.shape_cast %76 : vector<1x2x256xf32> to vector<2x256xf32>
    %cst_29 = arith.constant dense<0.000000e+00> : vector<2x256xf32>
    %78 = tpu.matmul %74, %0, %cst_29 {dimension_numbers = #tpu.dot_dimension_numbers<[1], [0], [0], [1], [0, 0, 1, 1], [], []>} : vector<2x128xf32>, vector<128x256xf32>, vector<2x256xf32> -> vector<2x256xf32>
    %79 = arith.addf %77, %78 : vector<2x256xf32>
    %80 = arith.negf %79 : vector<2x256xf32>
    %81 = math.exp %80 : vector<2x256xf32>
    %cst_30 = arith.constant 1.000000e+00 : f32
    %82 = vector.broadcast %cst_30 : f32 to vector<2x256xf32>
    %83 = arith.addf %82, %81 : vector<2x256xf32>
    %84 = arith.divf %82, %83 : vector<2x256xf32>
    %85 = vector.extract_strided_slice %84 {offsets = [0, 0], sizes = [2, 128], strides = [1, 1]} : vector<2x256xf32> to vector<2x128xf32>
    %86 = vector.extract_strided_slice %84 {offsets = [0, 128], sizes = [2, 128], strides = [1, 1]} : vector<2x256xf32> to vector<2x128xf32>
    %87 = arith.index_cast %c3_i32 : i32 to index
    %c0_31 = arith.constant 0 : index
    %c0_32 = arith.constant 0 : index
    %88 = vector.load %arg1[%87, %c0_31, %c0_32] : memref<4x2x128xf32, #tpu.memory_space<vmem>>, vector<1x2x128xf32>
    %89 = vector.shape_cast %88 : vector<1x2x128xf32> to vector<2x128xf32>
    %90 = arith.mulf %85, %74 : vector<2x128xf32>
    %cst_33 = arith.constant dense<0.000000e+00> : vector<2x128xf32>
    %91 = tpu.matmul %90, %1, %cst_33 {dimension_numbers = #tpu.dot_dimension_numbers<[1], [0], [0], [1], [0, 0, 1, 1], [], []>} : vector<2x128xf32>, vector<128x128xf32>, vector<2x128xf32> -> vector<2x128xf32>
    %92 = arith.addf %89, %91 : vector<2x128xf32>
    %93 = math.tanh %92 : vector<2x128xf32>
    %94 = arith.mulf %86, %74 : vector<2x128xf32>
    %cst_34 = arith.constant 1.000000e+00 : f32
    %95 = vector.broadcast %cst_34 : f32 to vector<2x128xf32>
    %96 = arith.subf %95, %86 : vector<2x128xf32>
    %97 = arith.mulf %96, %93 : vector<2x128xf32>
    %98 = arith.addf %94, %97 : vector<2x128xf32>
    %c4_i32 = arith.constant 4 : i32
    %c0_35 = arith.constant 0 : index
    %c0_36 = arith.constant 0 : index
    %99 = vector.load %arg4[%c0_35, %c0_36] : memref<2x128xf32, #tpu.memory_space<vmem>>, vector<2x128xf32>
    tpu.vector_store %arg4[%c0_35, %c0_36], %98 {strides = array<i32>} : memref<2x128xf32, #tpu.memory_space<vmem>>, vector<2x128xf32>,
    return
  }
}

</mosaic_0001>

<bundles_post_ra>
// kernel: tgcn_forward.1
= control target key start
LH: loop header
LB: loop body
LE: loop exit
PB: predicated region body
PF: predicated region fallthrough
CT: control target
= control target key end

     0   :  { %v1230_v3 = vmov 0.0   ;;  %v1231_v52 = vmov 0.0|0.0   ;;  %vm1232_vm0 = vmmov 0   ;;  %s1625_s2 = inlined_call_operand.vmem [shape: f32[128,256], index: 2, kind: input, shape index: {}]   ;;  %s1626_s3 = inlined_call_operand.vmem [shape: f32[128,128], index: 3, kind: input, shape index: {}]   ;;  %s1627_s0 = inlined_call_operand.vmem [shape: f32[4,2,256], index: 0, kind: input, shape index: {}]   ;;  %s1628_s1 = inlined_call_operand.vmem [shape: f32[4,2,128], index: 1, kind: input, shape index: {}]   ;;  %s1629_s4 = inlined_call_operand.vmem [shape: f32[2,128], index: 4, kind: output, shape index: {}]  }
   0x1   :  { %v18_v0 = vld [vmem:[%s1625_s2 + $0x8] sm:$0xff]  ;;  %v20_v1 = vld [vmem:[%s1625_s2 + $0x18] sm:$0xff]  ;;  %v17_v2 = vld [vmem:[%s1625_s2] sm:$0xff]  ;;  %130 = vmatprep.mubr.f32.mxu0 %v1230_v3  ;;  %1010 = vmatprep.subr.bf16.mxu1 %v1231_v52 }
   0x2   :  { %v1269_v4 = vpack.c.bf16 %v20_v1, %v18_v0  ;;  %v19_v5 = vld [vmem:[%s1625_s2 + $0x10] sm:$0xff]  ;;  %v22_v6 = vld [vmem:[%s1625_s2 + $0x28] sm:$0xff]  ;;  %v24_v7 = vld [vmem:[%s1625_s2 + $0x38] sm:$0xff]  ;;  %870 = vmatprep.mubr.msk.f32.mxu1 %vm1232_vm0, %v1230_v3 }
   0x3   :  { %v1280_v8 = vpack.c.bf16 %v19_v5, %v17_v2  ;;  %v1282_v9 = vpack.c.bf16 %v24_v7, %v22_v6  ;;  %v21_v10 = vld [vmem:[%s1625_s2 + $0x20] sm:$0xff]  ;;  %v23_v11 = vld [vmem:[%s1625_s2 + $0x30] sm:$0xff]  ;;  %v26_v12 = vld [vmem:[%s1625_s2 + $0x48] sm:$0xff] }
   0x4   :  { %979 = vmatprep.subr.bf16.mxu0 %v1269_v4  ;;  %v28_v13 = vld [vmem:[%s1625_s2 + $0x58] sm:$0xff]  ;;  %v1298_v14 = vpack.c.bf16 %v23_v11, %v21_v10  ;;  %v25_v16 = vld [vmem:[%s1625_s2 + $0x40] sm:$0xff]  ;;  %v27_v17 = vld [vmem:[%s1625_s2 + $0x50] sm:$0xff] }
   0x5   :  { %981 = vmatpush1.bf16.msra.mxu0 %v1280_v8  ;;  %v1301_v15 = vpack.c.bf16 %v28_v13, %v26_v12  ;;  %v30_v18 = vld [vmem:[%s1625_s2 + $0x68] sm:$0xff]  ;;  %v32_v19 = vld [vmem:[%s1625_s2 + $0x78] sm:$0xff]  ;;  %v1316_v20 = vpack.c.bf16 %v27_v17, %v25_v16  ;;  %v29_v22 = vld [vmem:[%s1625_s2 + $0x60] sm:$0xff]  ;;  %v1233_v16 = vmov 1983009808  }
   0x6   :  { %983 = vmatprep.subr.bf16.mxu0 %v1282_v9  ;;  %v1319_v21 = vpack.c.bf16 %v32_v19, %v30_v18  ;;  %v31_v23 = vld [vmem:[%s1625_s2 + $0x70] sm:$0xff]  ;;  %v34_v24 = vld [vmem:[%s1625_s2 + $0x88] sm:$0xff]  ;;  %v36_v25 = vld [vmem:[%s1625_s2 + $0x98] sm:$0xff]  ;;  %v141_v17 = vunpack.c.l.s4 %v1233_v16  ;;  %v143_v18 = vlaneseq }
   0x7   :  { %v1334_v26 = vpack.c.bf16 %v31_v23, %v29_v22  ;;  %v1337_v27 = vpack.c.bf16 %v36_v25, %v34_v24  ;;  %v33_v28 = vld [vmem:[%s1625_s2 + $0x80] sm:$0xff]  ;;  %v35_v29 = vld [vmem:[%s1625_s2 + $0x90] sm:$0xff]  ;;  %v38_v30 = vld [vmem:[%s1625_s2 + $0xa8] sm:$0xff] }
   0x8   :  { %v40_v31 = vld [vmem:[%s1625_s2 + $0xb8] sm:$0xff]  ;;  %v1352_v32 = vpack.c.bf16 %v35_v29, %v33_v28  ;;  %v37_v34 = vld [vmem:[%s1625_s2 + $0xa0] sm:$0xff]  ;;  %v39_v35 = vld [vmem:[%s1625_s2 + $0xb0] sm:$0xff]  ;;  %v142_v19 = vunpack.c.0.s8 %v141_v17  ;;  %v144_v22 = vshrl.u32 %v143_v18, 7 }
   0x9   :  { %985 = vmatpush1.bf16.msra.mxu0 %v1298_v14  ;;  %v1355_v33 = vpack.c.bf16 %v40_v31, %v38_v30  ;;  %v42_v36 = vld [vmem:[%s1625_s2 + $0xc8] sm:$0xff]  ;;  %v44_v37 = vld [vmem:[%s1625_s2 + $0xd8] sm:$0xff]  ;;  %v1370_v38 = vpack.c.bf16 %v39_v35, %v37_v34  ;;  %v41_v40 = vld [vmem:[%s1625_s2 + $0xc0] sm:$0xff] }
   0xa   :  { %987 = vmatprep.subr.bf16.mxu0 %v1301_v15  ;;  %v1373_v39 = vpack.c.bf16 %v44_v37, %v42_v36  ;;  %v43_v41 = vld [vmem:[%s1625_s2 + $0xd0] sm:$0xff]  ;;  %v46_v42 = vld [vmem:[%s1625_s2 + $0xe8] sm:$0xff]  ;;  %v48_v43 = vld [vmem:[%s1625_s2 + $0xf8] sm:$0xff]  ;;  %v1506_v24 = vsub.s32 %v142_v19, %v144_v22 }
   0xb   :  { %v1388_v44 = vpack.c.bf16 %v43_v41, %v41_v40  ;;  %v1391_v45 = vpack.c.bf16 %v48_v43, %v46_v42  ;;  %v45_v46 = vld [vmem:[%s1625_s2 + $0xe0] sm:$0xff]  ;;  %v47_v47 = vld [vmem:[%s1625_s2 + $0xf0] sm:$0xff]  ;;  %v50_v50 = vld [vmem:[%s1626_s3 + $0x8] sm:$0xff] }
   0xc   :  { %v1400_v48 = vpack.c.bf16 %v47_v47, %v45_v46  ;;  %v49_v49 = vld [vmem:[%s1626_s3] sm:$0xff]  ;;  %v51_v53 = vld [vmem:[%s1626_s3 + $0x10] sm:$0xff]  ;;  %v52_v54 = vld [vmem:[%s1626_s3 + $0x18] sm:$0xff] }
   0xd   :  { %989 = vmatpush1.bf16.msra.mxu0 %v1316_v20  ;;  %v1429_v51 = vpack.c.bf16 %v50_v50, %v49_v49  ;;  %v1440_v55 = vpack.c.bf16 %v52_v54, %v51_v53  ;;  %v53_v56 = vld [vmem:[%s1626_s3 + $0x20] sm:$0xff]  ;;  %v54_v57 = vld [vmem:[%s1626_s3 + $0x28] sm:$0xff]  ;;  %v55_v59 = vld [vmem:[%s1626_s3 + $0x30] sm:$0xff] }
   0xe   :  { %991 = vmatprep.subr.bf16.mxu0 %v1319_v21  ;;  %v1450_v58 = vpack.c.bf16 %v54_v57, %v53_v56  ;;  %v56_v60 = vld [vmem:[%s1626_s3 + $0x38] sm:$0xff]  ;;  %v57_v62 = vld [vmem:[%s1626_s3 + $0x40] sm:$0xff]  ;;  %v58_v63 = vld [vmem:[%s1626_s3 + $0x48] sm:$0xff] }
   0xf   :  { %1012 = vmatpush3.bf16.msra.mxu1 %v1429_v51  ;;  %v1460_v61 = vpack.c.bf16 %v56_v60, %v55_v59  ;;  %v1470_v0 = vpack.c.bf16 %v58_v63, %v57_v62  ;;  %v59_v1 = vld [vmem:[%s1626_s3 + $0x50] sm:$0xff]  ;;  %v60_v2 = vld [vmem:[%s1626_s3 + $0x58] sm:$0xff]  ;;  %v61_v6 = vld [vmem:[%s1626_s3 + $0x60] sm:$0xff] }
  0x10   :  { %1013 = vmatprep.subr.bf16.mxu1 %v1231_v52  ;;  %v1480_v5 = vpack.c.bf16 %v60_v2, %v59_v1  ;;  %v62_v7 = vld [vmem:[%s1626_s3 + $0x68] sm:$0xff]  ;;  %v63_v11 = vld [vmem:[%s1626_s3 + $0x70] sm:$0xff]  ;;  %v64_v12 = vld [vmem:[%s1626_s3 + $0x78] sm:$0xff] }
  0x11   :  { %993 = vmatpush1.bf16.msra.mxu0 %v1334_v26  ;;  %v1491_v10 = vpack.c.bf16 %v62_v7, %v61_v6  ;;  %v1501_v13 = vpack.c.bf16 %v64_v12, %v63_v11  ;;  %v65_v29 = vld [vmem:[%s1627_s0] sm:$0xf]  ;;  %v761_v62 = vld [vmem:[%s1627_s0 + $0x4] sm:$0xf] }
  0x12   :  { %995 = vmatprep.subr.bf16.mxu0 %v1337_v27  ;;  %v155_v41 = vld [vmem:[%s1628_s1] sm:$0x3] }
  0x13   :  { %1015 = vmatpush3.bf16.msra.mxu1 %v1440_v55 }
  0x14   :  { %1016 = vmatprep.subr.bf16.mxu1 %v1231_v52 }
  0x15   :  { %997 = vmatpush1.bf16.msra.mxu0 %v1352_v32 }
  0x16   :  { %999 = vmatprep.subr.bf16.mxu0 %v1355_v33 }
  0x17   :  { %1018 = vmatpush3.bf16.msra.mxu1 %v1450_v58 }
  0x18   :  { %1019 = vmatprep.subr.bf16.mxu1 %v1231_v52 }
  0x19   :  { %1001 = vmatpush1.bf16.msra.mxu0 %v1370_v38 }
  0x1a   :  { %1003 = vmatprep.subr.bf16.mxu0 %v1373_v39 }
  0x1b   :  { %1021 = vmatpush3.bf16.msra.mxu1 %v1460_v61 }
  0x1c   :  { %1022 = vmatprep.subr.bf16.mxu1 %v1231_v52 }
  0x1d   :  { %1005 = vmatpush1.bf16.msra.mxu0 %v1388_v44 }
  0x1e   :  { %1007 = vmatprep.subr.bf16.mxu0 %v1391_v45 }
  0x1f   :  { %1024 = vmatpush3.bf16.msra.mxu1 %v1470_v0 }
  0x20   :  { %1025 = vmatprep.subr.bf16.mxu1 %v1231_v52 }
  0x21   :  { %1009 = vmatpush1.bf16.msra.mxu0 %v1400_v48 }
  0x22   :  { %1035 = vmatprep.subr.bf16.mxu0 %v1269_v4 }
  0x23   :  { %1027 = vmatpush3.bf16.msra.mxu1 %v1480_v5 }
  0x24   :  { %131 = vmatmul.mubr.f32.vlgmr.msra.gmra.mrb[0].mxu0 %v1230_v3  ;;  %1028 = vmatprep.subr.bf16.mxu1 %v1231_v52 }
  0x25   :  { %1037 = vmatpush1.bf16.msra.mxu0 %v1280_v8  ;;  %302 = vmatprep.mubr.f32.mxu0 %v1230_v3 }
  0x26   :  { %1039 = vmatprep.subr.bf16.mxu0 %v1282_v9 }
  0x27   :  { %1030 = vmatpush3.bf16.msra.mxu1 %v1491_v10 }
  0x28   :  { %1031 = vmatprep.subr.bf16.mxu1 %v1231_v52 }
  0x29   :  { %1041 = vmatpush1.bf16.msra.mxu0 %v1298_v14 }
  0x2a   :  { %1043 = vmatprep.subr.bf16.mxu0 %v1301_v15 }
  0x2b   :  { %1033 = vmatpush3.bf16.msra.mxu1 %v1501_v13 }
  0x2c   :  { %1066 = vmatprep.subr.bf16.mxu1 %v1231_v52 }
  0x2d   :  { %1045 = vmatpush1.bf16.msra.mxu0 %v1316_v20 }
  0x2e   :  { %1047 = vmatprep.subr.bf16.mxu0 %v1319_v21 }
  0x31   :  { %1049 = vmatpush1.bf16.msra.mxu0 %v1334_v26 }
  0x32   :  { %1051 = vmatprep.subr.bf16.mxu0 %v1337_v27 }
  0x35   :  { %1053 = vmatpush1.bf16.msra.mxu0 %v1352_v32 }
  0x36   :  { %1055 = vmatprep.subr.bf16.mxu0 %v1355_v33 }
  0x39   :  { %1057 = vmatpush1.bf16.msra.mxu0 %v1370_v38 }
  0x3a   :  { %1059 = vmatprep.subr.bf16.mxu0 %v1373_v39 }
  0x3d   :  { %1061 = vmatpush1.bf16.msra.mxu0 %v1388_v44 }
  0x3e   :  { %1063 = vmatprep.subr.bf16.mxu0 %v1391_v45 }
  0x41   :  { %1065 = vmatpush1.bf16.msra.mxu0 %v1400_v48 }
  0x42   :  { %1091 = vmatprep.subr.bf16.mxu0 %v1269_v4 }
  0xf7   :  { %v132_v23 = vpop.f32.mrb[0].mxu0 }
  0xf8   :  { %v134_v25 = vpop.f32.mrb[1].mxu0 }
  0xf9   :  { %v139_v28 = vcombine.low %v132_v23, %v134_v25 }
  0xfb   :  { %v146_v30 = vrot.slane %v139_v28, %v1506_v24 }
  0xfd   :  { %v148_v31 = vadd.f32 %v146_v30, %v65_v29 }
  0xff   :  { %v760_v34 = vmul.f32 -1.442695, %v148_v31 }
 0x101   :  { %1206 = vpow2.f32 %v760_v34 }
 0x10b   :  { %v1207_v35 = vpop.eup %1206 }
 0x10c   :  { %v152_v36 = vadd.f32 1.0, %v1207_v35 }
 0x10e   :  { %1208 = vrcp.f32 %v152_v36 }
 0x118   :  { %v1209_v37 = vpop.eup %1208 }
 0x119   :  { %v156_v40 = vmul.f32 0.0, %v1209_v37  ;;  %v230_v47 = vrot.slane %v1209_v37, 2 }
 0x11b   :  { %871 = vmatmul.mubr.f32.vlgmr.msra.gmra.mrb[0].mxu1 %v156_v40  ;;  %v233_v49 = vsub.f32 1.0, %v230_v47  ;;  %v232_v53 = vmul.f32 0.0, %v230_v47 }
 0x11c   :  { %1068 = vmatpush3.bf16.msra.mxu1 %v1429_v51  ;;  %905 = vmatprep.mubr.msk.f32.mxu1 %vm1232_vm0, %v1230_v3 }
 0x11d   :  { %1069 = vmatprep.subr.bf16.mxu1 %v1231_v52 }
 0x120   :  { %1071 = vmatpush3.bf16.msra.mxu1 %v1440_v55 }
 0x121   :  { %1072 = vmatprep.subr.bf16.mxu1 %v1231_v52 }
 0x124   :  { %1074 = vmatpush3.bf16.msra.mxu1 %v1450_v58 }
 0x125   :  { %1075 = vmatprep.subr.bf16.mxu1 %v1231_v52 }
 0x128   :  { %1077 = vmatpush3.bf16.msra.mxu1 %v1460_v61 }
 0x129   :  { %1078 = vmatprep.subr.bf16.mxu1 %v1231_v52 }
 0x12c   :  { %1080 = vmatpush3.bf16.msra.mxu1 %v1470_v0 }
 0x12d   :  { %1081 = vmatprep.subr.bf16.mxu1 %v1231_v52 }
 0x130   :  { %1083 = vmatpush3.bf16.msra.mxu1 %v1480_v5 }
 0x131   :  { %1084 = vmatprep.subr.bf16.mxu1 %v1231_v52 }
 0x134   :  { %1086 = vmatpush3.bf16.msra.mxu1 %v1491_v10 }
 0x135   :  { %1087 = vmatprep.subr.bf16.mxu1 %v1231_v52 }
 0x138   :  { %1089 = vmatpush3.bf16.msra.mxu1 %v1501_v13 }
 0x139   :  { %1122 = vmatprep.subr.bf16.mxu1 %v1231_v52 }
 0x1ee   :  { %v223_v42 = vpop.f32.mrb[0].mxu1 }
 0x1ef   :  { %v227_v43 = vadd.f32 %v223_v42, %v155_v41  ;;  %v872_v46 = vpop.f32.mrb[1].mxu1  ;;  %v769_v41 = vld [vmem:[%s1628_s1 + $0x6] sm:$0x3] }
 0x1f1   :  { %1210 = vtanh.f32 %v227_v43 }
 0x1fb   :  { %v1211_v50 = vpop.eup %1210 }
 0x1fc   :  { %v234_v54 = vmul.f32 %v1211_v50, %v233_v49 }
 0x1fe   :  { %v235_v56 = vadd.f32 %v234_v54, %v232_v53 }
 0x200   :  { %303 = vmatmul.mubr.f32.vlgmr.msra.gmra.mrb[2].mxu0 %v235_v56 }
 0x201   :  { %1093 = vmatpush1.bf16.msra.mxu0 %v1280_v8  ;;  %475 = vmatprep.mubr.f32.mxu0 %v1230_v3 }
 0x202   :  { %1095 = vmatprep.subr.bf16.mxu0 %v1282_v9 }
 0x205   :  { %1097 = vmatpush1.bf16.msra.mxu0 %v1298_v14 }
 0x206   :  { %1099 = vmatprep.subr.bf16.mxu0 %v1301_v15 }
 0x209   :  { %1101 = vmatpush1.bf16.msra.mxu0 %v1316_v20 }
 0x20a   :  { %1103 = vmatprep.subr.bf16.mxu0 %v1319_v21 }
 0x20d   :  { %1105 = vmatpush1.bf16.msra.mxu0 %v1334_v26 }
 0x20e   :  { %1107 = vmatprep.subr.bf16.mxu0 %v1337_v27 }
 0x211   :  { %1109 = vmatpush1.bf16.msra.mxu0 %v1352_v32 }
 0x212   :  { %1111 = vmatprep.subr.bf16.mxu0 %v1355_v33 }
 0x215   :  { %1113 = vmatpush1.bf16.msra.mxu0 %v1370_v38 }
 0x216   :  { %1115 = vmatprep.subr.bf16.mxu0 %v1373_v39 }
 0x219   :  { %1117 = vmatpush1.bf16.msra.mxu0 %v1388_v44 }
 0x21a   :  { %1119 = vmatprep.subr.bf16.mxu0 %v1391_v45 }
 0x21d   :  { %1121 = vmatpush1.bf16.msra.mxu0 %v1400_v48 }
 0x21e   :  { %1147 = vmatprep.subr.bf16.mxu0 %v1269_v4  ;;  %v763_v4 = vld [vmem:[%s1628_s1 + $0x2] sm:$0x3] }
 0x2d3   :  { %v304_v57 = vpop.f32.mrb[2].mxu0 }
 0x2d4   :  { %v306_v59 = vpop.f32.mrb[3].mxu0 }
 0x2d5   :  { %v311_v60 = vcombine.low %v304_v57, %v306_v59 }
 0x2d7   :  { %v318_v63 = vrot.slane %v311_v60, %v1506_v24 }
 0x2d9   :  { %v320_v1 = vadd.f32 %v761_v62, %v318_v63 }
 0x2db   :  { %v762_v2 = vmul.f32 -1.442695, %v320_v1 }
 0x2dd   :  { %1212 = vpow2.f32 %v762_v2 }
 0x2e7   :  { %v1213_v6 = vpop.eup %1212 }
 0x2e8   :  { %v324_v7 = vadd.f32 1.0, %v1213_v6 }
 0x2ea   :  { %1214 = vrcp.f32 %v324_v7 }
 0x2f4   :  { %v1215_v11 = vpop.eup %1214 }
 0x2f5   :  { %v329_v12 = vmul.f32 %v1215_v11, %v235_v56  ;;  %v403_v19 = vrot.slane %v1215_v11, 2 }
 0x2f7   :  { %906 = vmatmul.mubr.f32.vlgmr.msra.gmra.mrb[2].mxu1 %v329_v12  ;;  %v406_v22 = vsub.f32 1.0, %v403_v19  ;;  %v405_v25 = vmul.f32 %v403_v19, %v235_v56 }
 0x2f8   :  { %1124 = vmatpush3.bf16.msra.mxu1 %v1429_v51  ;;  %940 = vmatprep.mubr.msk.f32.mxu1 %vm1232_vm0, %v1230_v3 }
 0x2f9   :  { %1125 = vmatprep.subr.bf16.mxu1 %v1231_v52 }
 0x2fc   :  { %1127 = vmatpush3.bf16.msra.mxu1 %v1440_v55 }
 0x2fd   :  { %1128 = vmatprep.subr.bf16.mxu1 %v1231_v52 }
 0x300   :  { %1130 = vmatpush3.bf16.msra.mxu1 %v1450_v58 }
 0x301   :  { %1131 = vmatprep.subr.bf16.mxu1 %v1231_v52 }
 0x304   :  { %1133 = vmatpush3.bf16.msra.mxu1 %v1460_v61 }
 0x305   :  { %1134 = vmatprep.subr.bf16.mxu1 %v1231_v52 }
 0x308   :  { %1136 = vmatpush3.bf16.msra.mxu1 %v1470_v0 }
 0x309   :  { %1137 = vmatprep.subr.bf16.mxu1 %v1231_v52 }
 0x30c   :  { %1139 = vmatpush3.bf16.msra.mxu1 %v1480_v5 }
 0x30d   :  { %1140 = vmatprep.subr.bf16.mxu1 %v1231_v52 }
 0x310   :  { %1142 = vmatpush3.bf16.msra.mxu1 %v1491_v10 }
 0x311   :  { %1143 = vmatprep.subr.bf16.mxu1 %v1231_v52 }
 0x314   :  { %1145 = vmatpush3.bf16.msra.mxu1 %v1501_v13 }
 0x315   :  { %1178 = vmatprep.subr.bf16.mxu1 %v1231_v52 }
 0x3ca   :  { %v396_v16 = vpop.f32.mrb[2].mxu1 }
 0x3cb   :  { %v400_v17 = vadd.f32 %v763_v4, %v396_v16  ;;  %v907_v18 = vpop.f32.mrb[3].mxu1 }
 0x3cd   :  { %1216 = vtanh.f32 %v400_v17 }
 0x3d7   :  { %v1217_v23 = vpop.eup %1216 }
 0x3d8   :  { %v407_v28 = vmul.f32 %v1217_v23, %v406_v22 }
 0x3da   :  { %v408_v29 = vadd.f32 %v407_v28, %v405_v25 }
 0x3dc   :  { %476 = vmatmul.mubr.f32.vlgmr.msra.gmra.mrb[4].mxu0 %v408_v29 }
 0x3dd   :  { %1149 = vmatpush1.bf16.msra.mxu0 %v1280_v8  ;;  %648 = vmatprep.mubr.f32.mxu0 %v1230_v3 }
 0x3de   :  { %1151 = vmatprep.subr.bf16.mxu0 %v1282_v9 }
 0x3e1   :  { %1153 = vmatpush1.bf16.msra.mxu0 %v1298_v14 }
 0x3e2   :  { %1155 = vmatprep.subr.bf16.mxu0 %v1301_v15  ;;  %v764_v15 = vld [vmem:[%s1627_s0 + $0x8] sm:$0xf] }
 0x3e5   :  { %1157 = vmatpush1.bf16.msra.mxu0 %v1316_v20 }
 0x3e6   :  { %1159 = vmatprep.subr.bf16.mxu0 %v1319_v21 }
 0x3e9   :  { %1161 = vmatpush1.bf16.msra.mxu0 %v1334_v26 }
 0x3ea   :  { %1163 = vmatprep.subr.bf16.mxu0 %v1337_v27 }
 0x3ed   :  { %1165 = vmatpush1.bf16.msra.mxu0 %v1352_v32 }
 0x3ee   :  { %1167 = vmatprep.subr.bf16.mxu0 %v1355_v33 }
 0x3f1   :  { %1169 = vmatpush1.bf16.msra.mxu0 %v1370_v38 }
 0x3f2   :  { %1171 = vmatprep.subr.bf16.mxu0 %v1373_v39 }
 0x3f5   :  { %1173 = vmatpush1.bf16.msra.mxu0 %v1388_v44 }
 0x3f6   :  { %1175 = vmatprep.subr.bf16.mxu0 %v1391_v45 }
 0x3f9   :  { %1177 = vmatpush1.bf16.msra.mxu0 %v1400_v48 }
 0x4af   :  { %v477_v8 = vpop.f32.mrb[4].mxu0 }
 0x4b0   :  { %v479_v9 = vpop.f32.mrb[5].mxu0 }
 0x4b1   :  { %v484_v14 = vcombine.low %v477_v8, %v479_v9 }
 0x4b3   :  { %v491_v20 = vrot.slane %v484_v14, %v1506_v24 }
 0x4b5   :  { %v493_v21 = vadd.f32 %v764_v15, %v491_v20 }
 0x4b7   :  { %v765_v26 = vmul.f32 -1.442695, %v493_v21 }
 0x4b9   :  { %1218 = vpow2.f32 %v765_v26 }
 0x4c3   :  { %v1219_v27 = vpop.eup %1218 }
 0x4c4   :  { %v497_v32 = vadd.f32 1.0, %v1219_v27 }
 0x4c6   :  { %1220 = vrcp.f32 %v497_v32 }
 0x4d0   :  { %v1221_v33 = vpop.eup %1220 }
 0x4d1   :  { %v502_v38 = vmul.f32 %v1221_v33, %v408_v29  ;;  %v576_v48 = vrot.slane %v1221_v33, 2 }
 0x4d3   :  { %941 = vmatmul.mubr.f32.vlgmr.msra.gmra.mrb[4].mxu1 %v502_v38 }
 0x4d4   :  { %1180 = vmatpush3.bf16.msra.mxu1 %v1429_v51  ;;  %975 = vmatprep.mubr.msk.f32.mxu1 %vm1232_vm0, %v1230_v3  ;;  %v766_v3 = vld [vmem:[%s1628_s1 + $0x4] sm:$0x3]  ;;  %v579_v51 = vsub.f32 1.0, %v576_v48 }
 0x4d5   :  { %1181 = vmatprep.subr.bf16.mxu1 %v1231_v52 }
 0x4d8   :  { %1183 = vmatpush3.bf16.msra.mxu1 %v1440_v55 }
 0x4d9   :  { %1184 = vmatprep.subr.bf16.mxu1 %v1231_v52 }
 0x4dc   :  { %1186 = vmatpush3.bf16.msra.mxu1 %v1450_v58  ;;  %v578_v58 = vmul.f32 %v576_v48, %v408_v29 }
 0x4dd   :  { %1187 = vmatprep.subr.bf16.mxu1 %v1231_v52 }
 0x4e0   :  { %1189 = vmatpush3.bf16.msra.mxu1 %v1460_v61 }
 0x4e1   :  { %1190 = vmatprep.subr.bf16.mxu1 %v1231_v52 }
 0x4e4   :  { %1192 = vmatpush3.bf16.msra.mxu1 %v1470_v0 }
 0x4e5   :  { %1193 = vmatprep.subr.bf16.mxu1 %v1231_v52 }
 0x4e8   :  { %1195 = vmatpush3.bf16.msra.mxu1 %v1480_v5 }
 0x4e9   :  { %1196 = vmatprep.subr.bf16.mxu1 %v1231_v52 }
 0x4ec   :  { %1198 = vmatpush3.bf16.msra.mxu1 %v1491_v10 }
 0x4ed   :  { %1199 = vmatprep.subr.bf16.mxu1 %v1231_v52 }
 0x4f0   :  { %1201 = vmatpush3.bf16.msra.mxu1 %v1501_v13  ;;  %v767_v13 = vld [vmem:[%s1627_s0 + $0xc] sm:$0xf] }
 0x5a6   :  { %v569_v39 = vpop.f32.mrb[4].mxu1 }
 0x5a7   :  { %v573_v44 = vadd.f32 %v766_v3, %v569_v39  ;;  %v942_v45 = vpop.f32.mrb[5].mxu1 }
 0x5a9   :  { %1222 = vtanh.f32 %v573_v44 }
 0x5b3   :  { %v1223_v55 = vpop.eup %1222 }
 0x5b4   :  { %v580_v61 = vmul.f32 %v1223_v55, %v579_v51 }
 0x5b6   :  { %v581_v0 = vadd.f32 %v580_v61, %v578_v58 }
 0x5b8   :  { %649 = vmatmul.mubr.f32.vlgmr.msra.gmra.mrb[6].mxu0 %v581_v0 }
 0x68b   :  { %v650_v5 = vpop.f32.mrb[6].mxu0 }
 0x68c   :  { %v652_v10 = vpop.f32.mrb[7].mxu0 }
 0x68d   :  { %v657_v52 = vcombine.low %v650_v5, %v652_v10 }
 0x68f   :  { %v664_v30 = vrot.slane %v657_v52, %v1506_v24 }
 0x691   :  { %v666_v31 = vadd.f32 %v767_v13, %v664_v30 }
 0x693   :  { %v768_v34 = vmul.f32 -1.442695, %v666_v31 }
 0x695   :  { %1224 = vpow2.f32 %v768_v34 }
 0x69f   :  { %v1225_v35 = vpop.eup %1224 }
 0x6a0   :  { %v670_v36 = vadd.f32 1.0, %v1225_v35 }
 0x6a2   :  { %1226 = vrcp.f32 %v670_v36 }
 0x6ac   :  { %v1227_v37 = vpop.eup %1226 }
 0x6ad   :  { %v675_v40 = vmul.f32 %v1227_v37, %v581_v0  ;;  %v749_v47 = vrot.slane %v1227_v37, 2 }
 0x6af   :  { %976 = vmatmul.mubr.f32.vlgmr.msra.gmra.mrb[6].mxu1 %v675_v40  ;;  %v752_v49 = vsub.f32 1.0, %v749_v47  ;;  %v751_v50 = vmul.f32 %v749_v47, %v581_v0 }
 0x782   :  { %v742_v42 = vpop.f32.mrb[6].mxu1 }
 0x783   :  { %v746_v43 = vadd.f32 %v769_v41, %v742_v42  ;;  %v977_v46 = vpop.f32.mrb[7].mxu1 }
 0x785   :  { %1228 = vtanh.f32 %v746_v43 }
 0x78f   :  { %v1229_v24 = vpop.eup %1228 }
 0x790   :  { %v753_v53 = vmul.f32 %v1229_v24, %v752_v49 }
 0x792   :  { %v754_v54 = vadd.f32 %v753_v53, %v751_v50 }
 0x794   :  { %755 = vst [vmem:[%s1629_s4] sm:$0x3] %v754_v54 }

</bundles_post_ra>
